<compile_context>
chip_gen: v7x
topology: tpu7x:2x2x1
jax: 0.10.0
libtpu: 0.0.40
codegen_flags: <defaults>
</compile_context>

<pallas_src>
import functools

import jax
import jax.numpy as jnp
from jax.experimental import pallas as pl
from jax.experimental.pallas import tpu as pltpu


def _round_up(x, m):
    return (x + m - 1) // m * m


def _pad2d(x, rows, cols):
    r, c = x.shape
    return jnp.pad(x, ((0, rows - r), (0, cols - c)))


def _l2_normalize(h):
    # F.normalize(h, p=2, dim=-1) == h / max(||h||_2, 1e-12); one EUP rsqrt.
    ss = jnp.sum(h * h, axis=-1, keepdims=True)
    return h * jax.lax.rsqrt(jnp.maximum(ss, 1e-24))


# ----------------------------------------------------------------------------
# Fused small-graph kernel: both SAGEConv layers in one pallas_call.
# ----------------------------------------------------------------------------
def _fused_sage_kernel(a_ref, x_ref, w1l_ref, w1r_ref, b1_ref,
                       w2l_ref, w2r_ref, b2_ref, o_ref):
    a = a_ref[...]
    x = x_ref[...]

    # --- layer 1: mean-aggregate, project, bias, normalize, ReLU -----------
    agg1 = jnp.dot(a, x, preferred_element_type=jnp.float32)
    h = (jnp.dot(agg1.astype(jnp.bfloat16), w1l_ref[...],
                 preferred_element_type=jnp.float32)
         + jnp.dot(x, w1r_ref[...], preferred_element_type=jnp.float32)
         + b1_ref[...])
    h = jnp.maximum(_l2_normalize(h), 0.0)
    hb = h.astype(jnp.bfloat16)

    # --- layer 2 ------------------------------------------------------------
    agg2 = jnp.dot(a, hb, preferred_element_type=jnp.float32)
    h2 = (jnp.dot(agg2.astype(jnp.bfloat16), w2l_ref[...],
                  preferred_element_type=jnp.float32)
          + jnp.dot(hb, w2r_ref[...], preferred_element_type=jnp.float32)
          + b2_ref[...])
    o_ref[...] = _l2_normalize(h2).astype(o_ref.dtype)


def fused_sage(a, x, w1l, w1r, b1, w2l, w2r, b2, *, out_dtype):
    n_pad = a.shape[0]
    f_in = x.shape[1]
    h_f = w1l.shape[1]
    out_f = w2l.shape[1]
    return pl.pallas_call(
        _fused_sage_kernel,
        out_shape=jax.ShapeDtypeStruct((n_pad, out_f), out_dtype),
        grid=(1,),
        in_specs=[
            pl.BlockSpec((n_pad, n_pad), lambda i: (0, 0)),  # A
            pl.BlockSpec((n_pad, f_in), lambda i: (0, 0)),   # X
            pl.BlockSpec((f_in, h_f), lambda i: (0, 0)),     # W1_l
            pl.BlockSpec((f_in, h_f), lambda i: (0, 0)),     # W1_r
            pl.BlockSpec((1, h_f), lambda i: (0, 0)),        # b1
            pl.BlockSpec((h_f, out_f), lambda i: (0, 0)),    # W2_l
            pl.BlockSpec((h_f, out_f), lambda i: (0, 0)),    # W2_r
            pl.BlockSpec((1, out_f), lambda i: (0, 0)),      # b2
        ],
        out_specs=pl.BlockSpec((n_pad, out_f), lambda i: (0, 0)),
        compiler_params=pltpu.CompilerParams(
            dimension_semantics=("arbitrary",),
            vmem_limit_bytes=32 * 1024 * 1024,
        ),
    )(a, x, w1l, w1r, b1, w2l, w2r, b2)


# ----------------------------------------------------------------------------
# Tiled per-layer kernel for large graphs.
# ----------------------------------------------------------------------------
def _sage_conv_kernel(a_ref, xs_ref, xd_ref, wl_ref, wr_ref, b_ref, o_ref,
                      acc_ref, *, relu):
    """One SAGEConv layer tile: accumulate A[i,k] @ X[k] over the K axis, then
    (last K tile only) project, add root path + bias, L2-normalize, ReLU."""
    k = pl.program_id(1)

    @pl.when(k == 0)
    def _init():
        acc_ref[...] = jnp.zeros_like(acc_ref)

    # Mean aggregation of neighbor features (A is row-normalized adjacency),
    # bf16 operands, f32 accumulation on the MXU.
    acc_ref[...] += jnp.dot(a_ref[...], xs_ref[...],
                            preferred_element_type=jnp.float32)

    @pl.when(k == pl.num_programs(1) - 1)
    def _finalize():
        agg = acc_ref[...].astype(jnp.bfloat16)
        h = (jnp.dot(agg, wl_ref[...], preferred_element_type=jnp.float32)
             + jnp.dot(xd_ref[...], wr_ref[...],
                       preferred_element_type=jnp.float32)
             + b_ref[...])
        h = _l2_normalize(h)
        if relu:
            h = jnp.maximum(h, 0.0)
        o_ref[...] = h.astype(o_ref.dtype)


def sage_conv(a, x, w_l, w_r, b, *, relu, out_dtype):
    """a: (Np, Np) bf16 row-normalized adjacency (Np multiple of 128).
    x: (Np, F_in_pad) bf16.  w_*: (F_in_pad, F_out_pad) bf16.  b: (1, F_out_pad) f32."""
    n_pad = a.shape[0]
    f_in = x.shape[1]
    f_out = w_l.shape[1]

    tm = 256 if n_pad % 256 == 0 else 128
    tk = 512 if n_pad % 512 == 0 else (256 if n_pad % 256 == 0 else 128)
    tm = min(tm, n_pad)
    tk = min(tk, n_pad)
    grid = (n_pad // tm, n_pad // tk)

    kernel = functools.partial(_sage_conv_kernel, relu=relu)
    return pl.pallas_call(
        kernel,
        out_shape=jax.ShapeDtypeStruct((n_pad, f_out), out_dtype),
        grid=grid,
        in_specs=[
            pl.BlockSpec((tm, tk), lambda i, k: (i, k)),       # A tile
            pl.BlockSpec((tk, f_in), lambda i, k: (k, 0)),     # X source tile
            pl.BlockSpec((tm, f_in), lambda i, k: (i, 0)),     # X target tile (root)
            pl.BlockSpec((f_in, f_out), lambda i, k: (0, 0)),  # W_l
            pl.BlockSpec((f_in, f_out), lambda i, k: (0, 0)),  # W_r
            pl.BlockSpec((1, f_out), lambda i, k: (0, 0)),     # bias
        ],
        out_specs=pl.BlockSpec((tm, f_out), lambda i, k: (i, 0)),
        scratch_shapes=[pltpu.VMEM((tm, f_in), jnp.float32)],
        compiler_params=pltpu.CompilerParams(
            dimension_semantics=("parallel", "arbitrary"),
            vmem_limit_bytes=32 * 1024 * 1024,
        ),
    )(a, x, x, w_l, w_r, b)


# ----------------------------------------------------------------------------
# Host-side orchestration.
# ----------------------------------------------------------------------------
def dense_mean_adjacency(edge_index, num_nodes):
    """A[i, j] = 1/in_deg(i) for each edge j -> i (edge_index[0]=src, [1]=dst).
    Rows with zero in-degree stay all-zero (PyG mean aggregation -> 0)."""
    src = edge_index[0]
    dst = edge_index[1]
    a = jnp.zeros((num_nodes, num_nodes), jnp.float32).at[dst, src].add(1.0)
    deg = jnp.sum(a, axis=1, keepdims=True)
    return a / jnp.maximum(deg, 1.0)


def graph_sage_forward(x, edge_index, params, *, fused_max_nodes=512):
    """Eval-mode forward of GraphSAGE: dropout (identity), relu(conv1), conv2."""
    n, f_in = x.shape
    h_feats = params["w1_l"].shape[1]
    out_feats = params["w2_l"].shape[1]

    n_pad = _round_up(max(n, 8), 128)
    f_in_pad = _round_up(f_in, 128)
    h_pad = _round_up(h_feats, 128)
    out_pad = _round_up(out_feats, 128)

    a = dense_mean_adjacency(edge_index, n)
    a_p = _pad2d(a, n_pad, n_pad).astype(jnp.bfloat16)
    x_p = _pad2d(x, n_pad, f_in_pad).astype(jnp.bfloat16)

    w1l = _pad2d(params["w1_l"], f_in_pad, h_pad).astype(jnp.bfloat16)
    w1r = _pad2d(params["w1_r"], f_in_pad, h_pad).astype(jnp.bfloat16)
    b1 = _pad2d(params["b1"], 1, h_pad).astype(jnp.float32)
    w2l = _pad2d(params["w2_l"], h_pad, out_pad).astype(jnp.bfloat16)
    w2r = _pad2d(params["w2_r"], h_pad, out_pad).astype(jnp.bfloat16)
    b2 = _pad2d(params["b2"], 1, out_pad).astype(jnp.float32)

    # F.dropout(p=0.6, training=False) == identity.
    if n_pad <= fused_max_nodes:
        # Both layers fused in one kernel, h stays resident in VMEM.
        out = fused_sage(a_p, x_p, w1l, w1r, b1, w2l, w2r, b2,
                         out_dtype=jnp.float32)
    else:
        h = sage_conv(a_p, x_p, w1l, w1r, b1, relu=True,
                      out_dtype=jnp.bfloat16)
        out = sage_conv(a_p, h, w2l, w2r, b2, relu=False,
                        out_dtype=jnp.float32)
    return out[:n, :out_feats]


def reference_forward(x, edge_index, params):
    """Pure-JAX f32 reference (same math, no padding / bf16)."""
    n = x.shape[0]
    a = dense_mean_adjacency(edge_index, n)

    def conv(a, x, wl, wr, b, relu):
        h = (a @ x) @ wl + x @ wr + b
        nrm = jnp.sqrt(jnp.sum(h * h, axis=-1, keepdims=True))
        h = h / jnp.maximum(nrm, 1e-12)
        return jnp.maximum(h, 0.0) if relu else h

    h = conv(a, x, params["w1_l"], params["w1_r"], params["b1"], True)
    return conv(a, h, params["w2_l"], params["w2_r"], params["b2"], False)


def init_params(key, in_feats, h_feats, out_feats):
    k1, k2, k3, k4 = jax.random.split(key, 4)
    scale1 = 1.0 / jnp.sqrt(jnp.float32(in_feats))
    scale2 = 1.0 / jnp.sqrt(jnp.float32(h_feats))
    return {
        "w1_l": jax.random.normal(k1, (in_feats, h_feats), jnp.float32) * scale1,
        "w1_r": jax.random.normal(k2, (in_feats, h_feats), jnp.float32) * scale1,
        "b1": jnp.zeros((1, h_feats), jnp.float32),
        "w2_l": jax.random.normal(k3, (h_feats, out_feats), jnp.float32) * scale2,
        "w2_r": jax.random.normal(k4, (h_feats, out_feats), jnp.float32) * scale2,
        "b2": jnp.zeros((1, out_feats), jnp.float32),
    }


if __name__ == "__main__":
    N_NODES = 16
    N_EDGES = 40
    IN_FEATS, H_FEATS, OUT_FEATS = 8, 32, 16

    key = jax.random.PRNGKey(0)
    kx, ke_src, ke_dst, kp = jax.random.split(key, 4)

    x = jax.random.normal(kx, (N_NODES, IN_FEATS), jnp.float32)
    edge_index = jnp.stack(
        [
            jax.random.randint(ke_src, (N_EDGES,), 0, N_NODES),
            jax.random.randint(ke_dst, (N_EDGES,), 0, N_NODES),
        ],
        axis=0,
    ).astype(jnp.int32)

    params = init_params(kp, IN_FEATS, H_FEATS, OUT_FEATS)

    ref = reference_forward(x, edge_index, params)

    # Fused small-graph path (the one the test shapes exercise).
    fwd_fused = jax.jit(graph_sage_forward)
    out = jax.block_until_ready(fwd_fused(x, edge_index, params))
    assert out.shape == (N_NODES, OUT_FEATS)
    assert bool(jnp.all(jnp.isfinite(out)))
    max_err = float(jnp.max(jnp.abs(out - ref)))
    assert max_err < 0.25, f"fused path max abs error vs f32 reference: {max_err}"

    # Tiled large-graph path (forced), validated at the same shapes.
    fwd_tiled = jax.jit(functools.partial(graph_sage_forward, fused_max_nodes=0))
    out_t = jax.block_until_ready(fwd_tiled(x, edge_index, params))
    assert out_t.shape == (N_NODES, OUT_FEATS)
    assert bool(jnp.all(jnp.isfinite(out_t)))
    max_err_t = float(jnp.max(jnp.abs(out_t - ref)))
    assert max_err_t < 0.25, f"tiled path max abs error vs f32 reference: {max_err_t}"

    print("KERNEL_OK")
</pallas_src>

<mosaic_0001>
module attributes {stable_mosaic.version = 11 : i64} {
  func.func @_fused_sage_kernel(%arg0: i32, %arg1: memref<128x128xbf16, #tpu.memory_space<vmem>>, %arg2: memref<128x128xbf16, #tpu.memory_space<vmem>>, %arg3: memref<128x128xbf16, #tpu.memory_space<vmem>>, %arg4: memref<128x128xbf16, #tpu.memory_space<vmem>>, %arg5: memref<1x128xf32, #tpu.memory_space<vmem>>, %arg6: memref<128x128xbf16, #tpu.memory_space<vmem>>, %arg7: memref<128x128xbf16, #tpu.memory_space<vmem>>, %arg8: memref<1x128xf32, #tpu.memory_space<vmem>>, %arg9: memref<128x128xf32, #tpu.memory_space<vmem>>) attributes {dimension_semantics = [#tpu.dimension_semantics<arbitrary>], iteration_bounds = array<i64: 1>, scalar_prefetch = 0 : i64, scratch_operands = 0 : i64, tpu.core_type = #tpu.core_type<tc>, window_params = [{pipeline_mode = #tpu.pipeline_mode<synchronous>, transform_indices = @transform_0, window_bounds = array<i64: 128, 128>}, {pipeline_mode = #tpu.pipeline_mode<synchronous>, transform_indices = @transform_1, window_bounds = array<i64: 128, 128>}, {pipeline_mode = #tpu.pipeline_mode<synchronous>, transform_indices = @transform_2, window_bounds = array<i64: 128, 128>}, {pipeline_mode = #tpu.pipeline_mode<synchronous>, transform_indices = @transform_3, window_bounds = array<i64: 128, 128>}, {pipeline_mode = #tpu.pipeline_mode<synchronous>, transform_indices = @transform_4, window_bounds = array<i64: 1, 128>}, {pipeline_mode = #tpu.pipeline_mode<synchronous>, transform_indices = @transform_5, window_bounds = array<i64: 128, 128>}, {pipeline_mode = #tpu.pipeline_mode<synchronous>, transform_indices = @transform_6, window_bounds = array<i64: 128, 128>}, {pipeline_mode = #tpu.pipeline_mode<synchronous>, transform_indices = @transform_7, window_bounds = array<i64: 1, 128>}, {pipeline_mode = #tpu.pipeline_mode<synchronous>, transform_indices = @transform_8, window_bounds = array<i64: 128, 128>}]} {
    %c0 = arith.constant 0 : index
    %c0_0 = arith.constant 0 : index
    %0 = vector.load %arg1[%c0, %c0_0] : memref<128x128xbf16, #tpu.memory_space<vmem>>, vector<128x128xbf16>
    %c0_1 = arith.constant 0 : index
    %c0_2 = arith.constant 0 : index
    %1 = vector.load %arg2[%c0_1, %c0_2] : memref<128x128xbf16, #tpu.memory_space<vmem>>, vector<128x128xbf16>
    %cst = arith.constant dense<0.000000e+00> : vector<128x128xf32>
    %2 = tpu.matmul %0, %1, %cst {dimension_numbers = #tpu.dot_dimension_numbers<[1], [0], [0], [1], [0, 0, 1, 1], [], []>} : vector<128x128xbf16>, vector<128x128xbf16>, vector<128x128xf32> -> vector<128x128xf32>
    %3 = arith.truncf %2 : vector<128x128xf32> to vector<128x128xbf16>
    %c0_3 = arith.constant 0 : index
    %c0_4 = arith.constant 0 : index
    %4 = vector.load %arg3[%c0_3, %c0_4] : memref<128x128xbf16, #tpu.memory_space<vmem>>, vector<128x128xbf16>
    %cst_5 = arith.constant dense<0.000000e+00> : vector<128x128xf32>
    %5 = tpu.matmul %3, %4, %cst_5 {dimension_numbers = #tpu.dot_dimension_numbers<[1], [0], [0], [1], [0, 0, 1, 1], [], []>} : vector<128x128xbf16>, vector<128x128xbf16>, vector<128x128xf32> -> vector<128x128xf32>
    %c0_6 = arith.constant 0 : index
    %c0_7 = arith.constant 0 : index
    %6 = vector.load %arg4[%c0_6, %c0_7] : memref<128x128xbf16, #tpu.memory_space<vmem>>, vector<128x128xbf16>
    %cst_8 = arith.constant dense<0.000000e+00> : vector<128x128xf32>
    %7 = tpu.matmul %1, %6, %cst_8 {dimension_numbers = #tpu.dot_dimension_numbers<[1], [0], [0], [1], [0, 0, 1, 1], [], []>} : vector<128x128xbf16>, vector<128x128xbf16>, vector<128x128xf32> -> vector<128x128xf32>
    %8 = arith.addf %5, %7 : vector<128x128xf32>
    %c0_9 = arith.constant 0 : index
    %c0_10 = arith.constant 0 : index
    %9 = vector.load %arg5[%c0_9, %c0_10] : memref<1x128xf32, #tpu.memory_space<vmem>>, vector<1x128xf32>
    %10 = vector.broadcast %9 : vector<1x128xf32> to vector<128x128xf32>
    %11 = arith.addf %8, %10 : vector<128x128xf32>
    %12 = arith.mulf %11, %11 : vector<128x128xf32>
    %cst_11 = arith.constant dense<0.000000e+00> : vector<128xf32>
    %13 = vector.multi_reduction <add>, %12, %cst_11 [1] : vector<128x128xf32> to vector<128xf32>
    %14 = vector.shape_cast %13 : vector<128xf32> to vector<128x1xf32>
    %cst_12 = arith.constant 1.000000e-24 : f32
    %15 = vector.broadcast %cst_12 : f32 to vector<128x1xf32>
    %16 = arith.maximumf %14, %15 : vector<128x1xf32>
    %17 = math.rsqrt %16 : vector<128x1xf32>
    %18 = vector.broadcast %17 : vector<128x1xf32> to vector<128x128xf32>
    %19 = arith.mulf %11, %18 : vector<128x128xf32>
    %cst_13 = arith.constant 0.000000e+00 : f32
    %20 = vector.broadcast %cst_13 : f32 to vector<128x128xf32>
    %21 = arith.maximumf %19, %20 : vector<128x128xf32>
    %22 = arith.truncf %21 : vector<128x128xf32> to vector<128x128xbf16>
    %cst_14 = arith.constant dense<0.000000e+00> : vector<128x128xf32>
    %23 = tpu.matmul %0, %22, %cst_14 {dimension_numbers = #tpu.dot_dimension_numbers<[1], [0], [0], [1], [0, 0, 1, 1], [], []>} : vector<128x128xbf16>, vector<128x128xbf16>, vector<128x128xf32> -> vector<128x128xf32>
    %24 = arith.truncf %23 : vector<128x128xf32> to vector<128x128xbf16>
    %c0_15 = arith.constant 0 : index
    %c0_16 = arith.constant 0 : index
    %25 = vector.load %arg6[%c0_15, %c0_16] : memref<128x128xbf16, #tpu.memory_space<vmem>>, vector<128x128xbf16>
    %cst_17 = arith.constant dense<0.000000e+00> : vector<128x128xf32>
    %26 = tpu.matmul %24, %25, %cst_17 {dimension_numbers = #tpu.dot_dimension_numbers<[1], [0], [0], [1], [0, 0, 1, 1], [], []>} : vector<128x128xbf16>, vector<128x128xbf16>, vector<128x128xf32> -> vector<128x128xf32>
    %c0_18 = arith.constant 0 : index
    %c0_19 = arith.constant 0 : index
    %27 = vector.load %arg7[%c0_18, %c0_19] : memref<128x128xbf16, #tpu.memory_space<vmem>>, vector<128x128xbf16>
    %cst_20 = arith.constant dense<0.000000e+00> : vector<128x128xf32>
    %28 = tpu.matmul %22, %27, %cst_20 {dimension_numbers = #tpu.dot_dimension_numbers<[1], [0], [0], [1], [0, 0, 1, 1], [], []>} : vector<128x128xbf16>, vector<128x128xbf16>, vector<128x128xf32> -> vector<128x128xf32>
    %29 = arith.addf %26, %28 : vector<128x128xf32>
    %c0_21 = arith.constant 0 : index
    %c0_22 = arith.constant 0 : index
    %30 = vector.load %arg8[%c0_21, %c0_22] : memref<1x128xf32, #tpu.memory_space<vmem>>, vector<1x128xf32>
    %31 = vector.broadcast %30 : vector<1x128xf32> to vector<128x128xf32>
    %32 = arith.addf %29, %31 : vector<128x128xf32>
    %33 = arith.mulf %32, %32 : vector<128x128xf32>
    %cst_23 = arith.constant dense<0.000000e+00> : vector<128xf32>
    %34 = vector.multi_reduction <add>, %33, %cst_23 [1] : vector<128x128xf32> to vector<128xf32>
    %35 = vector.shape_cast %34 : vector<128xf32> to vector<128x1xf32>
    %cst_24 = arith.constant 1.000000e-24 : f32
    %36 = vector.broadcast %cst_24 : f32 to vector<128x1xf32>
    %37 = arith.maximumf %35, %36 : vector<128x1xf32>
    %38 = math.rsqrt %37 : vector<128x1xf32>
    %39 = vector.broadcast %38 : vector<128x1xf32> to vector<128x128xf32>
    %40 = arith.mulf %32, %39 : vector<128x128xf32>
    %c0_25 = arith.constant 0 : index
    %c0_26 = arith.constant 0 : index
    %41 = vector.load %arg9[%c0_25, %c0_26] : memref<128x128xf32, #tpu.memory_space<vmem>>, vector<128x128xf32>
    tpu.vector_store %arg9[%c0_25, %c0_26], %40 {strides = array<i32>} : memref<128x128xf32, #tpu.memory_space<vmem>>, vector<128x128xf32>,
    return
  }
  func.func @transform_0(%arg0: i32) -> (i32, i32) {
    %c0_i32 = arith.constant 0 : i32
    %c0_i32_0 = arith.constant 0 : i32
    %c0_i32_1 = arith.constant 0 : i32
    return %c0_i32, %c0_i32_0 : i32, i32
  }
  func.func @transform_1(%arg0: i32) -> (i32, i32) {
    %c0_i32 = arith.constant 0 : i32
    %c0_i32_0 = arith.constant 0 : i32
    %c0_i32_1 = arith.constant 0 : i32
    return %c0_i32, %c0_i32_0 : i32, i32
  }
  func.func @transform_2(%arg0: i32) -> (i32, i32) {
    %c0_i32 = arith.constant 0 : i32
    %c0_i32_0 = arith.constant 0 : i32
    %c0_i32_1 = arith.constant 0 : i32
    return %c0_i32, %c0_i32_0 : i32, i32
  }
  func.func @transform_3(%arg0: i32) -> (i32, i32) {
    %c0_i32 = arith.constant 0 : i32
    %c0_i32_0 = arith.constant 0 : i32
    %c0_i32_1 = arith.constant 0 : i32
    return %c0_i32, %c0_i32_0 : i32, i32
  }
  func.func @transform_4(%arg0: i32) -> (i32, i32) {
    %c0_i32 = arith.constant 0 : i32
    %c0_i32_0 = arith.constant 0 : i32
    %c0_i32_1 = arith.constant 0 : i32
    return %c0_i32, %c0_i32_0 : i32, i32
  }
  func.func @transform_5(%arg0: i32) -> (i32, i32) {
    %c0_i32 = arith.constant 0 : i32
    %c0_i32_0 = arith.constant 0 : i32
    %c0_i32_1 = arith.constant 0 : i32
    return %c0_i32, %c0_i32_0 : i32, i32
  }
  func.func @transform_6(%arg0: i32) -> (i32, i32) {
    %c0_i32 = arith.constant 0 : i32
    %c0_i32_0 = arith.constant 0 : i32
    %c0_i32_1 = arith.constant 0 : i32
    return %c0_i32, %c0_i32_0 : i32, i32
  }
  func.func @transform_7(%arg0: i32) -> (i32, i32) {
    %c0_i32 = arith.constant 0 : i32
    %c0_i32_0 = arith.constant 0 : i32
    %c0_i32_1 = arith.constant 0 : i32
    return %c0_i32, %c0_i32_0 : i32, i32
  }
  func.func @transform_8(%arg0: i32) -> (i32, i32) {
    %c0_i32 = arith.constant 0 : i32
    %c0_i32_0 = arith.constant 0 : i32
    %c0_i32_1 = arith.constant 0 : i32
    return %c0_i32, %c0_i32_0 : i32, i32
  }
}

</mosaic_0001>

<bundles_post_ra>
// kernel: graph_sage_forward.1
= control target key start
LH: loop header
LB: loop body
LE: loop exit
PB: predicated region body
PF: predicated region fallthrough
CT: control target
= control target key end

     0   :  { %s2277_s1 = inlined_call_operand.vmem [shape: bf16[128,128], index: 1, kind: input, shape index: {}]   ;;  %s2278_s0 = inlined_call_operand.vmem [shape: bf16[128,128], index: 0, kind: input, shape index: {}]   ;;  %s2279_s3 = inlined_call_operand.vmem [shape: bf16[128,128], index: 3, kind: input, shape index: {}]   ;;  %s2280_s2 = inlined_call_operand.vmem [shape: bf16[128,128], index: 2, kind: input, shape index: {}]   ;;  %s2281_s4 = inlined_call_operand.vmem [shape: f32[1,128], index: 4, kind: input, shape index: {}]   ;;  %s2282_s6 = inlined_call_operand.vmem [shape: bf16[128,128], index: 6, kind: input, shape index: {}]   ;;  %s2283_s5 = inlined_call_operand.vmem [shape: bf16[128,128], index: 5, kind: input, shape index: {}]   ;;  %s2284_s7 = inlined_call_operand.vmem [shape: f32[1,128], index: 7, kind: input, shape index: {}]   ;;  %s2285_s8 = inlined_call_operand.vmem [shape: f32[128,128], index: 8, kind: output, shape index: {}]  }
   0x1   :  { %v1824_v0 = vld [vmem:[%s2277_s1] sm:$0xff]   ;;  %v1829_v1 = vld [vmem:[%s2277_s1 + $0x8] sm:$0xff]   ;;  %v1837_v2 = vld [vmem:[%s2277_s1 + $0x10] sm:$0xff]  }
   0x2   :  { %1440 = vmatprep.subr.bf16.mxu1 %v1824_v0  ;;  %v1843_v3 = vld [vmem:[%s2277_s1 + $0x18] sm:$0xff]   ;;  %v1672_v4 = vld [vmem:[%s2278_s0] sm:$0xff]   ;;  %v1861_v6 = vld [vmem:[%s2277_s1 + $0x28] sm:$0xff]  }
   0x3   :  { %1441 = vmatpush3.bf16.msra.mxu1 %v1824_v0  ;;  %1456 = vmatprep.mubr.bf16.mxu1 %v1672_v4  ;;  %v1854_v5 = vld [vmem:[%s2277_s1 + $0x20] sm:$0xff]   ;;  %v1868_v7 = vld [vmem:[%s2277_s1 + $0x30] sm:$0xff]   ;;  %v1875_v8 = vld [vmem:[%s2277_s1 + $0x38] sm:$0xff]  }
   0x4   :  { %1442 = vmatprep.subr.bf16.mxu1 %v1829_v1  ;;  %1552 = vmatprep.mubr.bf16.mxu0 %v1672_v4  ;;  %v1680_v9 = vld [vmem:[%s2279_s3] sm:$0xff]   ;;  %v1885_v10 = vld [vmem:[%s2278_s0 + $0x8] sm:$0xff]   ;;  %v1891_v11 = vld [vmem:[%s2278_s0 + $0x10] sm:$0xff]  }
   0x5   :  { %v1681_v12 = vld [vmem:[%s2279_s3 + $0x8] sm:$0xff]   ;;  %v1682_v13 = vld [vmem:[%s2279_s3 + $0x10] sm:$0xff]   ;;  %v1904_v14 = vld [vmem:[%s2278_s0 + $0x18] sm:$0xff]  }
   0x6   :  { %v1909_v15 = vld [vmem:[%s2278_s0 + $0x20] sm:$0xff]   ;;  %v1683_v16 = vld [vmem:[%s2279_s3 + $0x18] sm:$0xff]   ;;  %v1922_v18 = vld [vmem:[%s2278_s0 + $0x28] sm:$0xff]  }
   0x7   :  { %1443 = vmatpush3.bf16.msra.mxu1 %v1829_v1  ;;  %v1684_v17 = vld [vmem:[%s2279_s3 + $0x20] sm:$0xff]   ;;  %v1927_v19 = vld [vmem:[%s2278_s0 + $0x30] sm:$0xff]   ;;  %v1685_v20 = vld [vmem:[%s2279_s3 + $0x28] sm:$0xff]  }
   0x8   :  { %1444 = vmatprep.subr.bf16.mxu1 %v1837_v2  ;;  %v1686_v21 = vld [vmem:[%s2279_s3 + $0x30] sm:$0xff]   ;;  %v1940_v22 = vld [vmem:[%s2278_s0 + $0x38] sm:$0xff]   ;;  %v1688_v24 = vld [vmem:[%s2280_s2] sm:$0xff]  }
   0x9   :  { %v1687_v23 = vld [vmem:[%s2279_s3 + $0x38] sm:$0xff]   ;;  %v1689_v25 = vld [vmem:[%s2280_s2 + $0x8] sm:$0xff]   ;;  %v1690_v26 = vld [vmem:[%s2280_s2 + $0x10] sm:$0xff]  }
   0xa   :  { %v1691_v27 = vld [vmem:[%s2280_s2 + $0x18] sm:$0xff]   ;;  %v1692_v28 = vld [vmem:[%s2280_s2 + $0x20] sm:$0xff]   ;;  %v1693_v29 = vld [vmem:[%s2280_s2 + $0x28] sm:$0xff]  }
   0xb   :  { %1445 = vmatpush3.bf16.msra.mxu1 %v1837_v2  ;;  %v1694_v30 = vld [vmem:[%s2280_s2 + $0x30] sm:$0xff]   ;;  %v1695_v31 = vld [vmem:[%s2280_s2 + $0x38] sm:$0xff]   ;;  %v1326_v56 = vld [vmem:[%s2281_s4] ss:$0 sm:$0xff] }
   0xc   :  { %1446 = vmatprep.subr.bf16.mxu1 %v1843_v3 }
   0xf   :  { %1447 = vmatpush3.bf16.msra.mxu1 %v1843_v3 }
  0x10   :  { %1448 = vmatprep.subr.bf16.mxu1 %v1854_v5 }
  0x13   :  { %1449 = vmatpush3.bf16.msra.mxu1 %v1854_v5 }
  0x14   :  { %1450 = vmatprep.subr.bf16.mxu1 %v1861_v6 }
  0x17   :  { %1451 = vmatpush3.bf16.msra.mxu1 %v1861_v6 }
  0x18   :  { %1452 = vmatprep.subr.bf16.mxu1 %v1868_v7 }
  0x1b   :  { %1453 = vmatpush3.bf16.msra.mxu1 %v1868_v7 }
  0x1c   :  { %1454 = vmatprep.subr.bf16.mxu1 %v1875_v8 }
  0x1f   :  { %1455 = vmatpush3.bf16.msra.mxu1 %v1875_v8 }
  0x20   :  { %1472 = vmatprep.subr.bf16.mxu1 %v1680_v9 }
  0x22   :  { %1457 = vmatmul.mubr.bf16.vlgmr.msra.gmra.mrb[0].mxu1 %v1885_v10 }
  0x23   :  { %1460 = vmatprep.mubr.bf16.mxu1 %v1891_v11  ;;  %1473 = vmatpush3.bf16.msra.mxu1 %v1680_v9 }
  0x24   :  { %1474 = vmatprep.subr.bf16.mxu1 %v1681_v12 }
  0x27   :  { %1475 = vmatpush3.bf16.msra.mxu1 %v1681_v12 }
  0x28   :  { %1476 = vmatprep.subr.bf16.mxu1 %v1682_v13 }
  0x2a   :  { %1461 = vmatmul.mubr.bf16.gmra.mrb[4].mxu1 %v1904_v14 }
  0x2b   :  { %1464 = vmatprep.mubr.bf16.mxu1 %v1909_v15  ;;  %1477 = vmatpush3.bf16.msra.mxu1 %v1682_v13 }
  0x2c   :  { %1478 = vmatprep.subr.bf16.mxu1 %v1683_v16 }
  0x2f   :  { %1479 = vmatpush3.bf16.msra.mxu1 %v1683_v16 }
  0x30   :  { %1480 = vmatprep.subr.bf16.mxu1 %v1684_v17 }
  0x32   :  { %1465 = vmatmul.mubr.bf16.gmra.mrb[8].mxu1 %v1922_v18 }
  0x33   :  { %1468 = vmatprep.mubr.bf16.mxu1 %v1927_v19  ;;  %1481 = vmatpush3.bf16.msra.mxu1 %v1684_v17 }
  0x34   :  { %1482 = vmatprep.subr.bf16.mxu1 %v1685_v20 }
  0x37   :  { %1483 = vmatpush3.bf16.msra.mxu1 %v1685_v20 }
  0x38   :  { %1484 = vmatprep.subr.bf16.mxu1 %v1686_v21 }
  0x3a   :  { %1469 = vmatmul.mubr.bf16.gmra.mrb[12].mxu1 %v1940_v22 }
  0x3b   :  { %1485 = vmatpush3.bf16.msra.mxu1 %v1686_v21  ;;  %1488 = vmatprep.mubr.bf16.mxu1 %v1824_v0 }
  0x3c   :  { %1486 = vmatprep.subr.bf16.mxu1 %v1687_v23 }
  0x3f   :  { %1487 = vmatpush3.bf16.msra.mxu1 %v1687_v23 }
  0x40   :  { %1504 = vmatprep.subr.bf16.mxu1 %v1688_v24 }
  0x42   :  { %1489 = vmatmul.mubr.bf16.vlgmr.msra.gmra.mrb[16].mxu1 %v1829_v1 }
  0x43   :  { %1505 = vmatpush3.bf16.msra.mxu1 %v1688_v24  ;;  %1492 = vmatprep.mubr.bf16.mxu1 %v1837_v2 }
  0x44   :  { %1506 = vmatprep.subr.bf16.mxu1 %v1689_v25 }
  0x47   :  { %1507 = vmatpush3.bf16.msra.mxu1 %v1689_v25 }
  0x48   :  { %1508 = vmatprep.subr.bf16.mxu1 %v1690_v26 }
  0x4a   :  { %1493 = vmatmul.mubr.bf16.gmra.mrb[20].mxu1 %v1843_v3 }
  0x4b   :  { %1509 = vmatpush3.bf16.msra.mxu1 %v1690_v26  ;;  %1496 = vmatprep.mubr.bf16.mxu1 %v1854_v5 }
  0x4c   :  { %1510 = vmatprep.subr.bf16.mxu1 %v1691_v27 }
  0x4f   :  { %1511 = vmatpush3.bf16.msra.mxu1 %v1691_v27 }
  0x50   :  { %1512 = vmatprep.subr.bf16.mxu1 %v1692_v28 }
  0x52   :  { %1497 = vmatmul.mubr.bf16.gmra.mrb[24].mxu1 %v1861_v6 }
  0x53   :  { %1513 = vmatpush3.bf16.msra.mxu1 %v1692_v28  ;;  %1500 = vmatprep.mubr.bf16.mxu1 %v1868_v7 }
  0x54   :  { %1514 = vmatprep.subr.bf16.mxu1 %v1693_v29 }
  0x57   :  { %1515 = vmatpush3.bf16.msra.mxu1 %v1693_v29 }
  0x58   :  { %1516 = vmatprep.subr.bf16.mxu1 %v1694_v30 }
  0x5a   :  { %1501 = vmatmul.mubr.bf16.gmra.mrb[28].mxu1 %v1875_v8 }
  0x5b   :  { %1517 = vmatpush3.bf16.msra.mxu1 %v1694_v30 }
  0x5c   :  { %1518 = vmatprep.subr.bf16.mxu1 %v1695_v31 }
  0x5f   :  { %1519 = vmatpush3.bf16.msra.mxu1 %v1695_v31 }
  0xf5   :  { %v1458_v32 = vpop.f32.mrb[0].mxu1 }
  0xf6   :  { %v192_v33 = vpop.f32.mrb[1].mxu1 }
  0xf7   :  { %v1459_v34 = vpop.f32.mrb[2].mxu1 }
  0xf8   :  { %v256_v35 = vpack.c.bf16 %v1459_v34, %v1458_v32  ;;  %v195_v36 = vpop.f32.mrb[3].mxu1 }
  0xf9   :  { %v255_v37 = vpack.c.bf16 %v195_v36, %v192_v33 }
  0xfb   :  { %1520 = vmatprep.mubr.bf16.mxu1 %v255_v37 }
  0xfc   :  { %1521 = vmatmul.mubr.bf16.vlgmr.msra.gmra.mrb[16].mxu1 %v256_v35 }
  0xfd   :  { %v1462_v38 = vpop.f32.mrb[4].mxu1 }
  0xfe   :  { %v208_v39 = vpop.f32.mrb[5].mxu1 }
  0xff   :  { %v1463_v40 = vpop.f32.mrb[6].mxu1 }
 0x100   :  { %v258_v41 = vpack.c.bf16 %v1463_v40, %v1462_v38  ;;  %v211_v42 = vpop.f32.mrb[7].mxu1 }
 0x101   :  { %v257_v43 = vpack.c.bf16 %v211_v42, %v208_v39 }
 0x103   :  { %1524 = vmatprep.mubr.bf16.mxu1 %v257_v43 }
 0x104   :  { %1525 = vmatmul.mubr.bf16.gmra.mrb[20].mxu1 %v258_v41 }
 0x105   :  { %v1466_v44 = vpop.f32.mrb[8].mxu1 }
 0x106   :  { %v224_v45 = vpop.f32.mrb[9].mxu1 }
 0x107   :  { %v1467_v46 = vpop.f32.mrb[10].mxu1 }
 0x108   :  { %v260_v47 = vpack.c.bf16 %v1467_v46, %v1466_v44  ;;  %v227_v48 = vpop.f32.mrb[11].mxu1 }
 0x109   :  { %v259_v49 = vpack.c.bf16 %v227_v48, %v224_v45 }
 0x10b   :  { %1528 = vmatprep.mubr.bf16.mxu1 %v259_v49 }
 0x10c   :  { %1529 = vmatmul.mubr.bf16.gmra.mrb[24].mxu1 %v260_v47 }
 0x10d   :  { %v1470_v50 = vpop.f32.mrb[12].mxu1 }
 0x10e   :  { %v240_v51 = vpop.f32.mrb[13].mxu1 }
 0x10f   :  { %v1471_v52 = vpop.f32.mrb[14].mxu1 }
 0x110   :  { %v262_v53 = vpack.c.bf16 %v1471_v52, %v1470_v50  ;;  %v243_v54 = vpop.f32.mrb[15].mxu1 }
 0x111   :  { %v261_v55 = vpack.c.bf16 %v243_v54, %v240_v51 }
 0x113   :  { %1532 = vmatprep.mubr.bf16.mxu1 %v261_v55 }
 0x114   :  { %1533 = vmatmul.mubr.bf16.gmra.mrb[28].mxu1 %v262_v53 }
 0x1cf   :  { %v1522_v57 = vpop.f32.mrb[16].mxu1 }
 0x1d0   :  { %v1981_v58 = vadd.f32 %v1522_v57, %v1326_v56  ;;  %v522_v59 = vpop.f32.mrb[17].mxu1 }
 0x1d1   :  { %v1983_v60 = vadd.f32 %v1326_v56, %v522_v59  ;;  %v1523_v61 = vpop.f32.mrb[18].mxu1 }
 0x1d2   :  { %v1985_v62 = vadd.f32 %v1523_v61, %v1326_v56  ;;  %v525_v63 = vpop.f32.mrb[19].mxu1  ;;  %v610_v0 = vmul.f32 %v1981_v58, %v1981_v58 }
 0x1d3   :  { %v1989_v1 = vadd.f32 %v1326_v56, %v525_v63  ;;  %v608_v2 = vmul.f32 %v1983_v60, %v1983_v60 }
 0x1d4   :  { %628 = vadd.xlane.f32.xlu1 %v610_v0  ;;  %v611_v3 = vmul.f32 %v1985_v62, %v1985_v62 }
 0x1d5   :  { %624 = vadd.xlane.f32.xlu0 %v608_v2  ;;  %v609_v5 = vmul.f32 %v1989_v1, %v1989_v1 }
 0x1d7   :  { %v1526_v4 = vpop.f32.mrb[20].mxu1 }
 0x1d8   :  { %630 = vadd.xlane.f32.xlu1 %v611_v3  ;;  %v538_v6 = vpop.f32.mrb[21].mxu1  ;;  %v1999_v12 = vadd.f32 %v1526_v4, %v1326_v56 }
 0x1d9   :  { %v1997_v7 = vadd.f32 %v1326_v56, %v538_v6  ;;  %626 = vadd.xlane.f32.xlu0 %v609_v5  ;;  %v1527_v8 = vpop.f32.mrb[22].mxu1 }
 0x1da   :  { %v541_v9 = vpop.f32.mrb[23].mxu1  ;;  %v2005_v17 = vadd.f32 %v1527_v8, %v1326_v56  ;;  %v614_v23 = vmul.f32 %v1999_v12, %v1999_v12 }
 0x1db   :  { %v2001_v13 = vadd.f32 %v1326_v56, %v541_v9  ;;  %v612_v16 = vmul.f32 %v1997_v7, %v1997_v7 }
 0x1dc   :  { %v615_v27 = vmul.f32 %v2005_v17, %v2005_v17 }
 0x1dd   :  { %632 = vadd.xlane.f32.xlu0 %v612_v16  ;;  %v613_v20 = vmul.f32 %v2001_v13, %v2001_v13 }
 0x1df   :  { %634 = vadd.xlane.f32.xlu1 %v613_v20  ;;  %v1530_v21 = vpop.f32.mrb[24].mxu1 }
 0x1e0   :  { %v554_v24 = vpop.f32.mrb[25].mxu1  ;;  %v2015_v29 = vadd.f32 %v1530_v21, %v1326_v56 }
 0x1e1   :  { %v2011_v25 = vadd.f32 %v1326_v56, %v554_v24  ;;  %636 = vadd.xlane.f32.xlu0 %v614_v23  ;;  %v1531_v26 = vpop.f32.mrb[26].mxu1 }
 0x1e2   :  { %v557_v28 = vpop.f32.mrb[27].mxu1  ;;  %v2021_v32 = vadd.f32 %v1531_v26, %v1326_v56  ;;  %v618_v35 = vmul.f32 %v2015_v29, %v2015_v29 }
 0x1e3   :  { %v2017_v30 = vadd.f32 %v1326_v56, %v557_v28  ;;  %638 = vadd.xlane.f32.xlu1 %v615_v27  ;;  %v616_v31 = vmul.f32 %v2011_v25, %v2011_v25 }
 0x1e4   :  { %v619_v39 = vmul.f32 %v2021_v32, %v2021_v32 }
 0x1e5   :  { %640 = vadd.xlane.f32.xlu0 %v616_v31  ;;  %v617_v33 = vmul.f32 %v2017_v30, %v2017_v30 }
 0x1e7   :  { %642 = vadd.xlane.f32.xlu1 %v617_v33  ;;  %v1534_v34 = vpop.f32.mrb[28].mxu1 }
 0x1e8   :  { %v570_v36 = vpop.f32.mrb[29].mxu1  ;;  %v2031_v41 = vadd.f32 %v1534_v34, %v1326_v56 }
 0x1e9   :  { %v2027_v37 = vadd.f32 %v1326_v56, %v570_v36  ;;  %644 = vadd.xlane.f32.xlu0 %v618_v35  ;;  %v1535_v38 = vpop.f32.mrb[30].mxu1 }
 0x1ea   :  { %v573_v40 = vpop.f32.mrb[31].mxu1  ;;  %v2037_v44 = vadd.f32 %v1535_v38, %v1326_v56  ;;  %v622_v46 = vmul.f32 %v2031_v41, %v2031_v41 }
 0x1eb   :  { %v2033_v42 = vadd.f32 %v1326_v56, %v573_v40  ;;  %646 = vadd.xlane.f32.xlu1 %v619_v39  ;;  %v620_v43 = vmul.f32 %v2027_v37, %v2027_v37 }
 0x1ec   :  { %v623_v47 = vmul.f32 %v2037_v44, %v2037_v44 }
 0x1ed   :  { %648 = vadd.xlane.f32.xlu0 %v620_v43  ;;  %v621_v45 = vmul.f32 %v2033_v42, %v2033_v42 }
 0x1ef   :  { %650 = vadd.xlane.f32.xlu1 %v621_v45 }
 0x1f1   :  { %652 = vadd.xlane.f32.xlu0 %v622_v46 }
 0x1f3   :  { %654 = vadd.xlane.f32.xlu1 %v623_v47 }
 0x261   :  { %v629_v48 = vpop.xlane.xlu1 %628 }
 0x262   :  { %v625_v49 = vpop.xlane.xlu0 %624  ;;  %v658_v50 = vmax.f32 %v629_v48, 1e-24 }
 0x263   :  { %v656_v51 = vmax.f32 %v625_v49, 1e-24 }
 0x265   :  { %1712 = vrsqrt.f32 %v656_v51  ;;  %v631_v52 = vpop.xlane.xlu1 %630 }
 0x266   :  { %v659_v53 = vmax.f32 %v631_v52, 1e-24  ;;  %v627_v54 = vpop.xlane.xlu0 %626  ;;  %1714 = vrsqrt.f32 %v658_v50 }
 0x267   :  { %v657_v55 = vmax.f32 %v627_v54, 1e-24 }
 0x268   :  { %1716 = vrsqrt.f32 %v659_v53 }
 0x269   :  { %1718 = vrsqrt.f32 %v657_v55 }
 0x26a   :  { %v633_v56 = vpop.xlane.xlu0 %632 }
 0x26b   :  { %v660_v57 = vmax.f32 %v633_v56, 1e-24 }
 0x26c   :  { %v635_v59 = vpop.xlane.xlu1 %634 }
 0x26d   :  { %1720 = vrsqrt.f32 %v660_v57  ;;  %v661_v61 = vmax.f32 %v635_v59, 1e-24 }
 0x26e   :  { %v637_v63 = vpop.xlane.xlu0 %636 }
 0x26f   :  { %v1713_v0 = vpop.eup %1712  ;;  %1722 = vrsqrt.f32 %v661_v61  ;;  %v662_v2 = vmax.f32 %v637_v63, 1e-24 }
 0x270   :  { %v639_v3 = vpop.xlane.xlu1 %638  ;;  %v1715_v4 = vpop.eup %1714  ;;  %v688_v9 = vmul.f32 %v1713_v0, %v1983_v60 }
 0x271   :  { %1724 = vrsqrt.f32 %v662_v2  ;;  %v663_v5 = vmax.f32 %v639_v3, 1e-24  ;;  %v690_v26 = vmul.f32 %v1715_v4, %v1981_v58 }
 0x272   :  { %v1717_v6 = vpop.eup %1716  ;;  %v641_v8 = vpop.xlane.xlu0 %640  ;;  %v704_v31 = vmax.f32 %v688_v9, 0.0 }
 0x273   :  { %v1719_v16 = vpop.eup %1718  ;;  %1726 = vrsqrt.f32 %v663_v5  ;;  %v664_v20 = vmax.f32 %v641_v8, 1e-24  ;;  %v691_v21 = vmul.f32 %v1717_v6, %v1985_v62  ;;  %v706_v39 = vmax.f32 %v690_v26, 0.0 }
 0x274   :  { %v643_v23 = vpop.xlane.xlu1 %642  ;;  %v689_v24 = vmul.f32 %v1719_v16, %v1989_v1 }
 0x275   :  { %1728 = vrsqrt.f32 %v664_v20  ;;  %v665_v27 = vmax.f32 %v643_v23, 1e-24  ;;  %v707_v34 = vmax.f32 %v691_v21, 0.0 }
 0x276   :  { %v645_v28 = vpop.xlane.xlu0 %644  ;;  %v705_v33 = vmax.f32 %v689_v24, 0.0 }
 0x277   :  { %v1721_v35 = vpop.eup %1720  ;;  %1730 = vrsqrt.f32 %v665_v27  ;;  %v666_v36 = vmax.f32 %v645_v28, 1e-24  ;;  %v2053_v43 = vpack.c.bf16 %v707_v34, %v706_v39  ;;  %v1708_v39 = vld [vmem:[%s2283_s5 + $0x20] sm:$0xff]  }
 0x278   :  { %v647_v60 = vpop.xlane.xlu1 %646  ;;  %v2049_v38 = vpack.c.bf16 %v705_v33, %v704_v31  ;;  %v692_v62 = vmul.f32 %v1721_v35, %v1997_v7 }
 0x279   :  { %v1723_v40 = vpop.eup %1722  ;;  %1732 = vrsqrt.f32 %v666_v36  ;;  %v667_v1 = vmax.f32 %v647_v60, 1e-24  ;;  %v1699_v60 = vld [vmem:[%s2282_s6 + $0x18] sm:$0xff]  }
 0x27a   :  { %1536 = vmatprep.subr.bf16.mxu0 %v2049_v38  ;;  %v649_v58 = vpop.xlane.xlu0 %648  ;;  %v693_v45 = vmul.f32 %v1723_v40, %v2001_v13  ;;  %v708_v49 = vmax.f32 %v692_v62, 0.0  ;;  %v1709_v62 = vld [vmem:[%s2283_s5 + $0x28] sm:$0xff]   ;;  %v1710_v40 = vld [vmem:[%s2283_s5 + $0x30] sm:$0xff]  }
 0x27b   :  { %v1725_v46 = vpop.eup %1724  ;;  %1734 = vrsqrt.f32 %v667_v1  ;;  %v668_v47 = vmax.f32 %v649_v58, 1e-24  ;;  %1537 = vmatpush3.bf16.msra.mxu0 %v2049_v38  ;;  %v1711_v1 = vld [vmem:[%s2283_s5 + $0x38] sm:$0xff]  }
 0x27c   :  { %1538 = vmatprep.subr.bf16.mxu0 %v2053_v43  ;;  %v651_v48 = vpop.xlane.xlu1 %650  ;;  %v709_v7 = vmax.f32 %v693_v45, 0.0  ;;  %v694_v50 = vmul.f32 %v1725_v46, %v1999_v12 }
 0x27d   :  { %v1727_v51 = vpop.eup %1726  ;;  %1736 = vrsqrt.f32 %v668_v47  ;;  %v669_v52 = vmax.f32 %v651_v48, 1e-24 }
 0x27e   :  { %v653_v53 = vpop.xlane.xlu0 %652  ;;  %v2059_v54 = vpack.c.bf16 %v709_v7, %v708_v49  ;;  %v695_v13 = vmul.f32 %v1727_v51, %v2005_v17  ;;  %v710_v59 = vmax.f32 %v694_v50, 0.0 }
 0x27f   :  { %v1729_v55 = vpop.eup %1728  ;;  %1738 = vrsqrt.f32 %v669_v52  ;;  %v670_v56 = vmax.f32 %v653_v53, 1e-24  ;;  %1539 = vmatpush3.bf16.msra.mxu0 %v2053_v43 }
 0x280   :  { %1540 = vmatprep.subr.bf16.mxu0 %v2059_v54  ;;  %v655_v57 = vpop.xlane.xlu1 %654  ;;  %v711_v61 = vmax.f32 %v695_v13, 0.0  ;;  %v696_v12 = vmul.f32 %v1729_v55, %v2011_v25 }
 0x281   :  { %v1731_v63 = vpop.eup %1730  ;;  %1740 = vrsqrt.f32 %v670_v56  ;;  %v671_v0 = vmax.f32 %v655_v57, 1e-24 }
 0x282   :  { %v2065_v2 = vpack.c.bf16 %v711_v61, %v710_v59  ;;  %v697_v3 = vmul.f32 %v1731_v63, %v2017_v30  ;;  %v712_v4 = vmax.f32 %v696_v12, 0.0 }
 0x283   :  { %v1733_v17 = vpop.eup %1732  ;;  %1742 = vrsqrt.f32 %v671_v0  ;;  %1541 = vmatpush3.bf16.msra.mxu0 %v2059_v54 }
 0x284   :  { %1542 = vmatprep.subr.bf16.mxu0 %v2065_v2  ;;  %v713_v5 = vmax.f32 %v697_v3, 0.0  ;;  %v698_v6 = vmul.f32 %v1733_v17, %v2015_v29  ;;  %v1343_v17 = vld [vmem:[%s2284_s7] ss:$0 sm:$0xff] }
 0x285   :  { %v1735_v8 = vpop.eup %1734 }
 0x286   :  { %v2071_v9 = vpack.c.bf16 %v713_v5, %v712_v4  ;;  %v699_v25 = vmul.f32 %v1735_v8, %v2021_v32  ;;  %v714_v30 = vmax.f32 %v698_v6, 0.0 }
 0x287   :  { %v1737_v16 = vpop.eup %1736  ;;  %1543 = vmatpush3.bf16.msra.mxu0 %v2065_v2 }
 0x288   :  { %1544 = vmatprep.subr.bf16.mxu0 %v2071_v9  ;;  %v715_v20 = vmax.f32 %v699_v25, 0.0  ;;  %v700_v21 = vmul.f32 %v1737_v16, %v2027_v37 }
 0x289   :  { %v1739_v23 = vpop.eup %1738 }
 0x28a   :  { %v2077_v24 = vpack.c.bf16 %v715_v20, %v714_v30  ;;  %v701_v26 = vmul.f32 %v1739_v23, %v2033_v42  ;;  %v716_v32 = vmax.f32 %v700_v21, 0.0  ;;  %v1696_v42 = vld [vmem:[%s2282_s6] sm:$0xff]  }
 0x28b   :  { %v1741_v29 = vpop.eup %1740  ;;  %1545 = vmatpush3.bf16.msra.mxu0 %v2071_v9 }
 0x28c   :  { %1546 = vmatprep.subr.bf16.mxu0 %v2077_v24  ;;  %v717_v27 = vmax.f32 %v701_v26, 0.0  ;;  %v702_v28 = vmul.f32 %v1741_v29, %v2031_v41  ;;  %v1697_v41 = vld [vmem:[%s2282_s6 + $0x8] sm:$0xff]  }
 0x28d   :  { %v1743_v31 = vpop.eup %1742 }
 0x28e   :  { %v726_v33 = vpack.c.bf16 %v717_v27, %v716_v32  ;;  %v703_v34 = vmul.f32 %v1743_v31, %v2037_v44  ;;  %v718_v37 = vmax.f32 %v702_v28, 0.0  ;;  %v1698_v44 = vld [vmem:[%s2282_s6 + $0x10] sm:$0xff]  }
 0x28f   :  { %1547 = vmatpush3.bf16.msra.mxu0 %v2077_v24 }
 0x290   :  { %1548 = vmatprep.subr.bf16.mxu0 %v726_v33  ;;  %v719_v35 = vmax.f32 %v703_v34, 0.0 }
 0x292   :  { %v727_v36 = vpack.c.bf16 %v719_v35, %v718_v37 }
 0x293   :  { %1549 = vmatpush3.bf16.msra.mxu0 %v726_v33 }
 0x294   :  { %1550 = vmatprep.subr.bf16.mxu0 %v727_v36 }
 0x297   :  { %1551 = vmatpush3.bf16.msra.mxu0 %v727_v36 }
 0x298   :  { %1568 = vmatprep.subr.bf16.mxu0 %v1696_v42 }
 0x29a   :  { %1553 = vmatmul.mubr.bf16.vlgmr.msra.gmra.mrb[0].mxu0 %v1885_v10  ;;  %v1700_v10 = vld [vmem:[%s2282_s6 + $0x20] sm:$0xff]  }
 0x29b   :  { %1569 = vmatpush3.bf16.msra.mxu0 %v1696_v42  ;;  %1556 = vmatprep.mubr.bf16.mxu0 %v1891_v11  ;;  %v1701_v11 = vld [vmem:[%s2282_s6 + $0x28] sm:$0xff]  }
 0x29c   :  { %1570 = vmatprep.subr.bf16.mxu0 %v1697_v41 }
 0x29f   :  { %1571 = vmatpush3.bf16.msra.mxu0 %v1697_v41 }
 0x2a0   :  { %1572 = vmatprep.subr.bf16.mxu0 %v1698_v44 }
 0x2a2   :  { %1557 = vmatmul.mubr.bf16.gmra.mrb[4].mxu0 %v1904_v14  ;;  %v1702_v14 = vld [vmem:[%s2282_s6 + $0x30] sm:$0xff]  }
 0x2a3   :  { %1573 = vmatpush3.bf16.msra.mxu0 %v1698_v44  ;;  %1560 = vmatprep.mubr.bf16.mxu0 %v1909_v15  ;;  %v1703_v15 = vld [vmem:[%s2282_s6 + $0x38] sm:$0xff]  }
 0x2a4   :  { %1574 = vmatprep.subr.bf16.mxu0 %v1699_v60 }
 0x2a7   :  { %1575 = vmatpush3.bf16.msra.mxu0 %v1699_v60 }
 0x2a8   :  { %1576 = vmatprep.subr.bf16.mxu0 %v1700_v10 }
 0x2aa   :  { %1561 = vmatmul.mubr.bf16.gmra.mrb[8].mxu0 %v1922_v18  ;;  %v1704_v18 = vld [vmem:[%s2283_s5] sm:$0xff]  }
 0x2ab   :  { %1577 = vmatpush3.bf16.msra.mxu0 %v1700_v10  ;;  %1564 = vmatprep.mubr.bf16.mxu0 %v1927_v19  ;;  %v1705_v19 = vld [vmem:[%s2283_s5 + $0x8] sm:$0xff]  }
 0x2ac   :  { %1578 = vmatprep.subr.bf16.mxu0 %v1701_v11 }
 0x2af   :  { %1579 = vmatpush3.bf16.msra.mxu0 %v1701_v11 }
 0x2b0   :  { %1580 = vmatprep.subr.bf16.mxu0 %v1702_v14 }
 0x2b2   :  { %1565 = vmatmul.mubr.bf16.gmra.mrb[12].mxu0 %v1940_v22  ;;  %v1706_v22 = vld [vmem:[%s2283_s5 + $0x10] sm:$0xff]  }
 0x2b3   :  { %1581 = vmatpush3.bf16.msra.mxu0 %v1702_v14  ;;  %1584 = vmatprep.mubr.bf16.mxu0 %v2049_v38  ;;  %v1707_v38 = vld [vmem:[%s2283_s5 + $0x18] sm:$0xff]  }
 0x2b4   :  { %1582 = vmatprep.subr.bf16.mxu0 %v1703_v15 }
 0x2b7   :  { %1583 = vmatpush3.bf16.msra.mxu0 %v1703_v15 }
 0x2b8   :  { %1600 = vmatprep.subr.bf16.mxu0 %v1704_v18 }
 0x2ba   :  { %1585 = vmatmul.mubr.bf16.vlgmr.msra.gmra.mrb[16].mxu0 %v2053_v43 }
 0x2bb   :  { %1588 = vmatprep.mubr.bf16.mxu0 %v2059_v54  ;;  %1601 = vmatpush3.bf16.msra.mxu0 %v1704_v18 }
 0x2bc   :  { %1602 = vmatprep.subr.bf16.mxu0 %v1705_v19 }
 0x2bf   :  { %1603 = vmatpush3.bf16.msra.mxu0 %v1705_v19 }
 0x2c0   :  { %1604 = vmatprep.subr.bf16.mxu0 %v1706_v22 }
 0x2c2   :  { %1589 = vmatmul.mubr.bf16.gmra.mrb[20].mxu0 %v2065_v2 }
 0x2c3   :  { %1592 = vmatprep.mubr.bf16.mxu0 %v2071_v9  ;;  %1605 = vmatpush3.bf16.msra.mxu0 %v1706_v22 }
 0x2c4   :  { %1606 = vmatprep.subr.bf16.mxu0 %v1707_v38 }
 0x2c7   :  { %1607 = vmatpush3.bf16.msra.mxu0 %v1707_v38 }
 0x2c8   :  { %1608 = vmatprep.subr.bf16.mxu0 %v1708_v39 }
 0x2ca   :  { %1593 = vmatmul.mubr.bf16.gmra.mrb[24].mxu0 %v2077_v24 }
 0x2cb   :  { %1596 = vmatprep.mubr.bf16.mxu0 %v726_v33  ;;  %1609 = vmatpush3.bf16.msra.mxu0 %v1708_v39 }
 0x2cc   :  { %1610 = vmatprep.subr.bf16.mxu0 %v1709_v62 }
 0x2cf   :  { %1611 = vmatpush3.bf16.msra.mxu0 %v1709_v62 }
 0x2d0   :  { %1612 = vmatprep.subr.bf16.mxu0 %v1710_v40 }
 0x2d2   :  { %1597 = vmatmul.mubr.bf16.gmra.mrb[28].mxu0 %v727_v36 }
 0x2d3   :  { %1613 = vmatpush3.bf16.msra.mxu0 %v1710_v40 }
 0x2d4   :  { %1614 = vmatprep.subr.bf16.mxu0 %v1711_v1 }
 0x2d7   :  { %1615 = vmatpush3.bf16.msra.mxu0 %v1711_v1 }
 0x36d   :  { %v1554_v58 = vpop.f32.mrb[0].mxu0 }
 0x36e   :  { %v762_v43 = vpop.f32.mrb[1].mxu0 }
 0x36f   :  { %v1555_v45 = vpop.f32.mrb[2].mxu0 }
 0x370   :  { %v826_v46 = vpack.c.bf16 %v1555_v45, %v1554_v58  ;;  %v765_v47 = vpop.f32.mrb[3].mxu0 }
 0x371   :  { %v825_v48 = vpack.c.bf16 %v765_v47, %v762_v43 }
 0x373   :  { %1616 = vmatprep.mubr.bf16.mxu0 %v825_v48 }
 0x374   :  { %1617 = vmatmul.mubr.bf16.vlgmr.msra.gmra.mrb[16].mxu0 %v826_v46 }
 0x375   :  { %v1558_v49 = vpop.f32.mrb[4].mxu0 }
 0x376   :  { %v778_v7 = vpop.f32.mrb[5].mxu0 }
 0x377   :  { %v1559_v50 = vpop.f32.mrb[6].mxu0 }
 0x378   :  { %v828_v51 = vpack.c.bf16 %v1559_v50, %v1558_v49  ;;  %v781_v52 = vpop.f32.mrb[7].mxu0 }
 0x379   :  { %v827_v53 = vpack.c.bf16 %v781_v52, %v778_v7 }
 0x37b   :  { %1620 = vmatprep.mubr.bf16.mxu0 %v827_v53 }
 0x37c   :  { %1621 = vmatmul.mubr.bf16.gmra.mrb[20].mxu0 %v828_v51 }
 0x37d   :  { %v1562_v54 = vpop.f32.mrb[8].mxu0 }
 0x37e   :  { %v794_v13 = vpop.f32.mrb[9].mxu0 }
 0x37f   :  { %v1563_v55 = vpop.f32.mrb[10].mxu0 }
 0x380   :  { %v830_v56 = vpack.c.bf16 %v1563_v55, %v1562_v54  ;;  %v797_v57 = vpop.f32.mrb[11].mxu0 }
 0x381   :  { %v829_v59 = vpack.c.bf16 %v797_v57, %v794_v13 }
 0x383   :  { %1624 = vmatprep.mubr.bf16.mxu0 %v829_v59 }
 0x384   :  { %1625 = vmatmul.mubr.bf16.gmra.mrb[24].mxu0 %v830_v56 }
 0x385   :  { %v1566_v61 = vpop.f32.mrb[12].mxu0 }
 0x386   :  { %v810_v12 = vpop.f32.mrb[13].mxu0 }
 0x387   :  { %v1567_v63 = vpop.f32.mrb[14].mxu0 }
 0x388   :  { %v832_v0 = vpack.c.bf16 %v1567_v63, %v1566_v61  ;;  %v813_v2 = vpop.f32.mrb[15].mxu0 }
 0x389   :  { %v831_v3 = vpack.c.bf16 %v813_v2, %v810_v12 }
 0x38b   :  { %1628 = vmatprep.mubr.bf16.mxu0 %v831_v3 }
 0x38c   :  { %1629 = vmatmul.mubr.bf16.gmra.mrb[28].mxu0 %v832_v0 }
 0x447   :  { %v1618_v4 = vpop.f32.mrb[16].mxu0 }
 0x448   :  { %v2149_v5 = vadd.f32 %v1618_v4, %v1343_v17  ;;  %v1092_v6 = vpop.f32.mrb[17].mxu0 }
 0x449   :  { %v1619_v8 = vpop.f32.mrb[18].mxu0  ;;  %v2151_v9 = vadd.f32 %v1343_v17, %v1092_v6 }
 0x44a   :  { %v2153_v25 = vadd.f32 %v1619_v8, %v1343_v17  ;;  %v1095_v16 = vpop.f32.mrb[19].mxu0  ;;  %v1180_v30 = vmul.f32 %v2149_v5, %v2149_v5 }
 0x44b   :  { %v2157_v20 = vadd.f32 %v1343_v17, %v1095_v16  ;;  %v1178_v23 = vmul.f32 %v2151_v9, %v2151_v9 }
 0x44c   :  { %1198 = vadd.xlane.f32.xlu0 %v1180_v30  ;;  %v1181_v21 = vmul.f32 %v2153_v25, %v2153_v25 }
 0x44d   :  { %v1179_v32 = vmul.f32 %v2157_v20, %v2157_v20 }
 0x44e   :  { %1200 = vadd.xlane.f32.xlu1 %v1181_v21 }
 0x44f   :  { %v1622_v24 = vpop.f32.mrb[20].mxu0 }
 0x450   :  { %v2163_v26 = vadd.f32 %v1622_v24, %v1343_v17  ;;  %1194 = vadd.xlane.f32.xlu0 %v1178_v23  ;;  %v1108_v29 = vpop.f32.mrb[21].mxu0 }
 0x451   :  { %v1623_v27 = vpop.f32.mrb[22].mxu0  ;;  %v2167_v28 = vadd.f32 %v1343_v17, %v1108_v29 }
 0x452   :  { %v2169_v31 = vadd.f32 %v1623_v27, %v1343_v17  ;;  %1196 = vadd.xlane.f32.xlu1 %v1179_v32  ;;  %v1111_v33 = vpop.f32.mrb[23].mxu0  ;;  %v1184_v34 = vmul.f32 %v2163_v26, %v2163_v26 }
 0x453   :  { %v2173_v37 = vadd.f32 %v1343_v17, %v1111_v33  ;;  %v1182_v36 = vmul.f32 %v2167_v28, %v2167_v28 }
 0x454   :  { %1206 = vadd.xlane.f32.xlu0 %v1184_v34  ;;  %v1185_v35 = vmul.f32 %v2169_v31, %v2169_v31 }
 0x455   :  { %v1183_v60 = vmul.f32 %v2173_v37, %v2173_v37 }
 0x456   :  { %1208 = vadd.xlane.f32.xlu1 %v1185_v35 }
 0x457   :  { %v1626_v42 = vpop.f32.mrb[24].mxu0 }
 0x458   :  { %v2179_v41 = vadd.f32 %v1626_v42, %v1343_v17  ;;  %1202 = vadd.xlane.f32.xlu0 %v1182_v36  ;;  %v1124_v44 = vpop.f32.mrb[25].mxu0 }
 0x459   :  { %v1627_v10 = vpop.f32.mrb[26].mxu0  ;;  %v2183_v11 = vadd.f32 %v1343_v17, %v1124_v44 }
 0x45a   :  { %v2185_v14 = vadd.f32 %v1627_v10, %v1343_v17  ;;  %1204 = vadd.xlane.f32.xlu1 %v1183_v60  ;;  %v1127_v15 = vpop.f32.mrb[27].mxu0  ;;  %v1188_v18 = vmul.f32 %v2179_v41, %v2179_v41 }
 0x45b   :  { %v2189_v19 = vadd.f32 %v1343_v17, %v1127_v15  ;;  %v1186_v38 = vmul.f32 %v2183_v11, %v2183_v11 }
 0x45c   :  { %1214 = vadd.xlane.f32.xlu0 %v1188_v18  ;;  %v1189_v22 = vmul.f32 %v2185_v14, %v2185_v14 }
 0x45d   :  { %v1187_v40 = vmul.f32 %v2189_v19, %v2189_v19 }
 0x45e   :  { %1216 = vadd.xlane.f32.xlu1 %v1189_v22 }
 0x45f   :  { %v1630_v39 = vpop.f32.mrb[28].mxu0 }
 0x460   :  { %1210 = vadd.xlane.f32.xlu0 %v1186_v38  ;;  %v1140_v62 = vpop.f32.mrb[29].mxu0  ;;  %v2199_v45 = vadd.f32 %v1630_v39, %v1343_v17 }
 0x461   :  { %v2197_v1 = vadd.f32 %v1343_v17, %v1140_v62  ;;  %v1631_v58 = vpop.f32.mrb[30].mxu0 }
 0x462   :  { %1212 = vadd.xlane.f32.xlu1 %v1187_v40  ;;  %v1143_v43 = vpop.f32.mrb[31].mxu0  ;;  %v2205_v48 = vadd.f32 %v1631_v58, %v1343_v17  ;;  %v1192_v7 = vmul.f32 %v2199_v45, %v2199_v45 }
 0x463   :  { %v2201_v46 = vadd.f32 %v1343_v17, %v1143_v43  ;;  %v1190_v47 = vmul.f32 %v2197_v1, %v2197_v1 }
 0x464   :  { %v1193_v50 = vmul.f32 %v2205_v48, %v2205_v48 }
 0x465   :  { %1218 = vadd.xlane.f32.xlu0 %v1190_v47  ;;  %v1191_v49 = vmul.f32 %v2201_v46, %v2201_v46 }
 0x467   :  { %1220 = vadd.xlane.f32.xlu1 %v1191_v49 }
 0x469   :  { %1222 = vadd.xlane.f32.xlu0 %v1192_v7 }
 0x46b   :  { %1224 = vadd.xlane.f32.xlu1 %v1193_v50 }
 0x4d9   :  { %v1199_v51 = vpop.xlane.xlu0 %1198 }
 0x4da   :  { %v1228_v52 = vmax.f32 %v1199_v51, 1e-24 }
 0x4db   :  { %v1201_v53 = vpop.xlane.xlu1 %1200 }
 0x4dc   :  { %1744 = vrsqrt.f32 %v1228_v52  ;;  %v1229_v54 = vmax.f32 %v1201_v53, 1e-24 }
 0x4dd   :  { %v1195_v13 = vpop.xlane.xlu0 %1194 }
 0x4de   :  { %1746 = vrsqrt.f32 %v1229_v54  ;;  %v1226_v55 = vmax.f32 %v1195_v13, 1e-24 }
 0x4df   :  { %v1197_v56 = vpop.xlane.xlu1 %1196 }
 0x4e0   :  { %1748 = vrsqrt.f32 %v1226_v55  ;;  %v1227_v57 = vmax.f32 %v1197_v56, 1e-24 }
 0x4e1   :  { %v1207_v59 = vpop.xlane.xlu0 %1206 }
 0x4e2   :  { %1750 = vrsqrt.f32 %v1227_v57  ;;  %v1232_v61 = vmax.f32 %v1207_v59, 1e-24 }
 0x4e3   :  { %v1209_v12 = vpop.xlane.xlu1 %1208 }
 0x4e4   :  { %1752 = vrsqrt.f32 %v1232_v61  ;;  %v1233_v63 = vmax.f32 %v1209_v12, 1e-24 }
 0x4e5   :  { %v1203_v0 = vpop.xlane.xlu0 %1202 }
 0x4e6   :  { %v1745_v2 = vpop.eup %1744  ;;  %1754 = vrsqrt.f32 %v1233_v63  ;;  %v1230_v3 = vmax.f32 %v1203_v0, 1e-24 }
 0x4e7   :  { %v1260_v17 = vmul.f32 %v1745_v2, %v2149_v5  ;;  %v1205_v4 = vpop.xlane.xlu1 %1204 }
 0x4e8   :  { %v1747_v6 = vpop.eup %1746  ;;  %1756 = vrsqrt.f32 %v1230_v3  ;;  %v1231_v8 = vmax.f32 %v1205_v4, 1e-24 }
 0x4e9   :  { %1276 = vst [vmem:[%s2285_s8 + $0x10] sm:$0xff] %v1260_v17  ;;  %v1261_v16 = vmul.f32 %v1747_v6, %v2153_v25  ;;  %v1215_v30 = vpop.xlane.xlu0 %1214 }
 0x4ea   :  { %v1749_v21 = vpop.eup %1748  ;;  %1758 = vrsqrt.f32 %v1231_v8  ;;  %v1236_v23 = vmax.f32 %v1215_v30, 1e-24 }
 0x4eb   :  { %1277 = vst [vmem:[%s2285_s8 + $0x18] sm:$0xff] %v1261_v16  ;;  %v1258_v5 = vmul.f32 %v1749_v21, %v2151_v9  ;;  %v1217_v24 = vpop.xlane.xlu1 %1216 }
 0x4ec   :  { %v1751_v29 = vpop.eup %1750  ;;  %1760 = vrsqrt.f32 %v1236_v23  ;;  %v1237_v32 = vmax.f32 %v1217_v24, 1e-24 }
 0x4ed   :  { %1274 = vst [vmem:[%s2285_s8] sm:$0xff] %v1258_v5  ;;  %v1259_v25 = vmul.f32 %v1751_v29, %v2157_v20  ;;  %v1211_v27 = vpop.xlane.xlu0 %1210 }
 0x4ee   :  { %v1753_v33 = vpop.eup %1752  ;;  %1762 = vrsqrt.f32 %v1237_v32  ;;  %v1234_v34 = vmax.f32 %v1211_v27, 1e-24 }
 0x4ef   :  { %1275 = vst [vmem:[%s2285_s8 + $0x8] sm:$0xff] %v1259_v25  ;;  %v1264_v9 = vmul.f32 %v1753_v33, %v2163_v26  ;;  %v1213_v35 = vpop.xlane.xlu1 %1212 }
 0x4f0   :  { %v1755_v36 = vpop.eup %1754  ;;  %1764 = vrsqrt.f32 %v1234_v34  ;;  %v1235_v42 = vmax.f32 %v1213_v35, 1e-24 }
 0x4f1   :  { %1280 = vst [vmem:[%s2285_s8 + $0x30] sm:$0xff] %v1264_v9  ;;  %v1265_v20 = vmul.f32 %v1755_v36, %v2169_v31 }
 0x4f2   :  { %v1757_v44 = vpop.eup %1756  ;;  %1766 = vrsqrt.f32 %v1235_v42  ;;  %v1219_v60 = vpop.xlane.xlu0 %1218 }
 0x4f3   :  { %1281 = vst [vmem:[%s2285_s8 + $0x38] sm:$0xff] %v1265_v20  ;;  %v1262_v10 = vmul.f32 %v1757_v44, %v2167_v28  ;;  %v1238_v26 = vmax.f32 %v1219_v60, 1e-24 }
 0x4f4   :  { %v1759_v15 = vpop.eup %1758  ;;  %v1221_v18 = vpop.xlane.xlu1 %1220 }
 0x4f5   :  { %1278 = vst [vmem:[%s2285_s8 + $0x20] sm:$0xff] %v1262_v10  ;;  %v1263_v22 = vmul.f32 %v1759_v15, %v2173_v37  ;;  %1768 = vrsqrt.f32 %v1238_v26  ;;  %v1239_v31 = vmax.f32 %v1221_v18, 1e-24 }
 0x4f6   :  { %v1761_v38 = vpop.eup %1760  ;;  %v1223_v39 = vpop.xlane.xlu0 %1222 }
 0x4f7   :  { %1279 = vst [vmem:[%s2285_s8 + $0x28] sm:$0xff] %v1263_v22  ;;  %v1268_v62 = vmul.f32 %v1761_v38, %v2179_v41  ;;  %1770 = vrsqrt.f32 %v1239_v31  ;;  %v1240_v28 = vmax.f32 %v1223_v39, 1e-24 }
 0x4f8   :  { %v1763_v40 = vpop.eup %1762  ;;  %v1225_v58 = vpop.xlane.xlu1 %1224 }
 0x4f9   :  { %1284 = vst [vmem:[%s2285_s8 + $0x50] sm:$0xff] %v1268_v62  ;;  %v1269_v37 = vmul.f32 %v1763_v40, %v2185_v14  ;;  %1772 = vrsqrt.f32 %v1240_v28  ;;  %v1241_v43 = vmax.f32 %v1225_v58, 1e-24 }
 0x4fa   :  { %v1765_v47 = vpop.eup %1764 }
 0x4fb   :  { %1285 = vst [vmem:[%s2285_s8 + $0x58] sm:$0xff] %v1269_v37  ;;  %v1266_v49 = vmul.f32 %v1765_v47, %v2183_v11  ;;  %1774 = vrsqrt.f32 %v1241_v43 }
 0x4fc   :  { %v1767_v41 = vpop.eup %1766 }
 0x4fd   :  { %1282 = vst [vmem:[%s2285_s8 + $0x40] sm:$0xff] %v1266_v49  ;;  %v1267_v7 = vmul.f32 %v1767_v41, %v2189_v19 }
 0x4ff   :  { %v1769_v50 = vpop.eup %1768  ;;  %1283 = vst [vmem:[%s2285_s8 + $0x48] sm:$0xff] %v1267_v7 }
 0x500   :  { %v1270_v14 = vmul.f32 %v1769_v50, %v2197_v1 }
 0x501   :  { %v1771_v51 = vpop.eup %1770 }
 0x502   :  { %1286 = vst [vmem:[%s2285_s8 + $0x60] sm:$0xff] %v1270_v14  ;;  %v1271_v11 = vmul.f32 %v1771_v51, %v2201_v46 }
 0x503   :  { %v1773_v52 = vpop.eup %1772 }
 0x504   :  { %1287 = vst [vmem:[%s2285_s8 + $0x68] sm:$0xff] %v1271_v11  ;;  %v1272_v19 = vmul.f32 %v1773_v52, %v2199_v45 }
 0x505   :  { %v1775_v53 = vpop.eup %1774 }
 0x506   :  { %1288 = vst [vmem:[%s2285_s8 + $0x70] sm:$0xff] %v1272_v19  ;;  %v1273_v1 = vmul.f32 %v1775_v53, %v2205_v48 }
 0x508   :  { %1289 = vst [vmem:[%s2285_s8 + $0x78] sm:$0xff] %v1273_v1 }

</bundles_post_ra>
